<compile_context>
chip_gen: v6e
topology: v6e:2x2x1
jax: 0.10.0
libtpu: 0.0.40
codegen_flags: <defaults>
</compile_context>

<pallas_src>
import functools
import math

import jax
import jax.numpy as jnp
from jax.experimental import pallas as pl
from jax.experimental.pallas import tpu as pltpu


def _attn_kernel(x_ref, k_ref, v_ref,
                 wq_ref, bq_ref, wo_ref, bo_ref,
                 gamma_ref, beta_ref,
                 o_ref,
                 q_sc, m_sc, l_sc, acc_sc,
                 *, d_model, d_pad, inv_scale, ln_eps, compute_dtype):
    # x_ref : (1, TQ, Dp)   query / residual tile (input dtype, e.g. f32)
    # k_ref : (1, TK, Dp)   pre-projected K tile (compute_dtype)
    # v_ref : (1, TK, Dp)   pre-projected V tile (compute_dtype)
    # wq/wo : (Dp, Dp)      weights in (in, out) layout, compute_dtype
    # bq/bo/gamma/beta : (1, Dp) f32
    # scratch: q_sc (TQ,Dp) compute_dtype, m/l (TQ,1) f32, acc (TQ,Dp) f32
    kv = pl.program_id(2)

    @pl.when(kv == 0)
    def _init():
        xq = x_ref[0].astype(compute_dtype)                           # (TQ, Dp)
        q = (jnp.dot(xq, wq_ref[...], preferred_element_type=jnp.float32)
             + bq_ref[...])
        # Fold 1/sqrt(d) into Q once instead of scaling every score tile.
        q_sc[...] = (q * inv_scale).astype(compute_dtype)
        m_sc[...] = jnp.full_like(m_sc, -jnp.inf)
        l_sc[...] = jnp.zeros_like(l_sc)
        acc_sc[...] = jnp.zeros_like(acc_sc)

    k = k_ref[0]                                                       # (TK, Dp)
    v = v_ref[0]

    # scores: contract on the feature axis, no explicit K transpose.
    s = jax.lax.dot_general(q_sc[...], k, (((1,), (1,)), ((), ())),
                            preferred_element_type=jnp.float32)       # (TQ, TK)

    # online softmax update (f32 statistics)
    m_new = jnp.maximum(m_sc[...], s.max(axis=-1, keepdims=True))
    alpha = jnp.exp(m_sc[...] - m_new)
    p = jnp.exp(s - m_new)
    l_sc[...] = alpha * l_sc[...] + p.sum(axis=-1, keepdims=True)
    acc_sc[...] = alpha * acc_sc[...] + jnp.dot(
        p.astype(compute_dtype), v, preferred_element_type=jnp.float32)
    m_sc[...] = m_new

    @pl.when(kv == pl.num_programs(2) - 1)
    def _finalize():
        attn_out = acc_sc[...] * pl.reciprocal(l_sc[...], approx=True)  # (TQ, Dp) f32
        proj = (jnp.dot(attn_out.astype(compute_dtype), wo_ref[...],
                        preferred_element_type=jnp.float32)
                + bo_ref[...])
        y = x_ref[0].astype(jnp.float32) + proj                         # residual
        # LayerNorm over the real d_model channels (padded lanes are zero).
        mu = jnp.sum(y, axis=-1, keepdims=True) * (1.0 / d_model)
        diff = y - mu
        if d_pad != d_model:
            lane = jax.lax.broadcasted_iota(jnp.int32, (1, d_pad), 1)
            diff = jnp.where(lane < d_model, diff, 0.0)
        var = jnp.sum(diff * diff, axis=-1, keepdims=True) * (1.0 / d_model)
        y_hat = diff * jax.lax.rsqrt(var + ln_eps)
        o_ref[0] = (y_hat * gamma_ref[...] + beta_ref[...]).astype(o_ref.dtype)


def _round_up(x, m):
    return (x + m - 1) // m * m


def _vmem_estimate(tq, tkv, d_pad, cb, xb, ob):
    """Rough VMEM bytes: double-buffered tiles + weights + scratch."""
    tiles = (2 * tq * d_pad * xb            # x tile (double buffered)
             + 2 * 2 * tkv * d_pad * cb     # K and V tiles
             + 2 * tq * d_pad * ob)         # out tile
    weights = 2 * (2 * d_pad * d_pad * cb + 4 * d_pad * 4)   # wq, wo + vectors
    scratch = tq * d_pad * cb + tq * d_pad * 4 + 2 * tq * 4
    return tiles + weights + scratch


def _pick_tiles(batch, n, d_pad, cb, xb, ob, vmem_budget=24 << 20,
                candidates=(512, 256, 128)):
    """VMEM-aware tile pick; 128/256-multiples for MXU edge alignment."""
    tq = None
    for c in candidates:                      # largest first
        if n % c == 0 and _vmem_estimate(c, c, d_pad, cb, xb, ob) <= vmem_budget:
            tq = c
            break
    if tq is None:
        for c in candidates:
            if n % c == 0:
                tq = c
                break
    if tq is None:
        tq = n                                # full extent (small N)
    tkv = tq
    # v7x has 2 TensorCores: make sure the "parallel" axes expose >= 2 programs.
    while batch * (n // tq) < 2 and tq % 16 == 0 and n % (tq // 2) == 0:
        tq //= 2
    return tq, tkv


def local_self_attention(x, wq, bq, wk, bk, wv, bv, wo, bo, gamma, beta,
                         *, ln_eps=1e-5, compute_dtype=jnp.bfloat16,
                         tq=None, tkv=None):
    """x: [B, N, d_model] -> [B, N, d_model].

    Weights are in (in, out) layout (transpose of torch nn.Linear.weight), i.e.
    the projection is x @ W + b.  Dropout is identity (eval mode).
    """
    B, N, D = x.shape
    Dp = _round_up(max(D, 128), 128)          # lane-dense feature dim
    inv_scale = 1.0 / math.sqrt(D)

    out_dtype = x.dtype
    cb = jnp.dtype(compute_dtype).itemsize
    xb = jnp.dtype(x.dtype).itemsize
    ob = jnp.dtype(out_dtype).itemsize

    atq, atkv = _pick_tiles(B, N, Dp, cb, xb, ob)
    tq = atq if tq is None else tq
    tkv = atkv if tkv is None else tkv
    assert N % tq == 0 and N % tkv == 0, "N must be divisible by the chosen tiles"

    est = _vmem_estimate(tq, tkv, Dp, cb, xb, ob)
    vmem_limit = int(min(max(2 * est, 16 << 20), 96 << 20))

    # --- pad the feature dim with zeros (weights/bias/LN params/x) ---
    def pad_w(w):
        return jnp.pad(w, ((0, Dp - D), (0, Dp - D)))

    def pad_v(v):
        return jnp.pad(v, (0, Dp - D)).reshape(1, Dp)

    x_p = jnp.pad(x, ((0, 0), (0, 0), (0, Dp - D)))   # residual kept in x dtype

    # Hoist K/V projections out of the kernel: computed once per batch (not once
    # per query tile) with bf16 MXU matmuls + f32 accumulation, stored bf16.
    x_c = x_p.astype(compute_dtype)
    k = (jnp.dot(x_c, pad_w(wk).astype(compute_dtype),
                 preferred_element_type=jnp.float32)
         + pad_v(bk).astype(jnp.float32)).astype(compute_dtype)
    v = (jnp.dot(x_c, pad_w(wv).astype(compute_dtype),
                 preferred_element_type=jnp.float32)
         + pad_v(bv).astype(jnp.float32)).astype(compute_dtype)

    wq_p = pad_w(wq).astype(compute_dtype)
    wo_p = pad_w(wo).astype(compute_dtype)
    bq_p = pad_v(bq).astype(jnp.float32)
    bo_p = pad_v(bo).astype(jnp.float32)
    gamma_p = pad_v(gamma).astype(jnp.float32)
    beta_p = pad_v(beta).astype(jnp.float32)

    kernel = functools.partial(_attn_kernel, d_model=D, d_pad=Dp,
                               inv_scale=inv_scale, ln_eps=ln_eps,
                               compute_dtype=compute_dtype)

    # Constant index maps -> weights / params stay VMEM-resident across the grid.
    wgt_spec = pl.BlockSpec((Dp, Dp), lambda b, qi, kv: (0, 0))
    vec_spec = pl.BlockSpec((1, Dp), lambda b, qi, kv: (0, 0))

    flops = int(2 * B * N * Dp * (2 * Dp + 2 * N))      # q/out proj + qk^T + pv
    bytes_accessed = int(x_p.size * xb + 2 * k.size * cb + B * N * Dp * ob
                         + 2 * Dp * Dp * cb + 6 * Dp * 4)
    cost = pl.CostEstimate(flops=flops, transcendentals=int(B * N * N),
                           bytes_accessed=bytes_accessed)

    out_p = pl.pallas_call(
        kernel,
        out_shape=jax.ShapeDtypeStruct((B, N, Dp), out_dtype),
        grid_spec=pltpu.PrefetchScalarGridSpec(
            num_scalar_prefetch=0,
            grid=(B, N // tq, N // tkv),
            in_specs=[
                pl.BlockSpec((1, tq, Dp), lambda b, qi, kv: (b, qi, 0)),   # x tile
                pl.BlockSpec((1, tkv, Dp), lambda b, qi, kv: (b, kv, 0)),  # K tile
                pl.BlockSpec((1, tkv, Dp), lambda b, qi, kv: (b, kv, 0)),  # V tile
                wgt_spec, vec_spec,   # wq, bq
                wgt_spec, vec_spec,   # wo, bo
                vec_spec, vec_spec,   # gamma, beta
            ],
            out_specs=pl.BlockSpec((1, tq, Dp), lambda b, qi, kv: (b, qi, 0)),
            scratch_shapes=[
                pltpu.VMEM((tq, Dp), compute_dtype),   # projected, pre-scaled Q
                pltpu.VMEM((tq, 1), jnp.float32),      # running max
                pltpu.VMEM((tq, 1), jnp.float32),      # running denom
                pltpu.VMEM((tq, Dp), jnp.float32),     # running numerator
            ],
        ),
        compiler_params=pltpu.CompilerParams(
            dimension_semantics=("parallel", "parallel", "arbitrary"),
            vmem_limit_bytes=vmem_limit,
        ),
        cost_estimate=cost,
    )(x_p, k, v, wq_p, bq_p, wo_p, bo_p, gamma_p, beta_p)

    return out_p[..., :D] if Dp != D else out_p


def _reference(x, wq, bq, wk, bk, wv, bv, wo, bo, gamma, beta, ln_eps=1e-5):
    D = x.shape[-1]
    q = x @ wq + bq
    k = x @ wk + bk
    v = x @ wv + bv
    attn = jax.nn.softmax(q @ jnp.swapaxes(k, -1, -2) / math.sqrt(D), axis=-1)
    out = attn @ v
    out = out @ wo + bo
    y = x + out
    mu = y.mean(axis=-1, keepdims=True)
    var = ((y - mu) ** 2).mean(axis=-1, keepdims=True)
    return (y - mu) / jnp.sqrt(var + ln_eps) * gamma + beta


if __name__ == "__main__":
    key = jax.random.PRNGKey(0)
    keys = jax.random.split(key, 11)

    B, N, d_model = 2, 8, 32
    x = jax.random.normal(keys[0], (B, N, d_model), jnp.float32)

    bound = 1.0 / math.sqrt(d_model)

    def _linear(kw, kb):
        w = jax.random.uniform(kw, (d_model, d_model), jnp.float32, -bound, bound)
        b = jax.random.uniform(kb, (d_model,), jnp.float32, -bound, bound)
        return w, b

    wq, bq = _linear(keys[1], keys[2])
    wk, bk = _linear(keys[3], keys[4])
    wv, bv = _linear(keys[5], keys[6])
    wo, bo = _linear(keys[7], keys[8])
    gamma = jnp.ones((d_model,), jnp.float32) + 0.05 * jax.random.normal(
        keys[9], (d_model,), jnp.float32)
    beta = 0.05 * jax.random.normal(keys[10], (d_model,), jnp.float32)

    out = local_self_attention(x, wq, bq, wk, bk, wv, bv, wo, bo, gamma, beta)
    out = jax.block_until_ready(out)

    ref = _reference(x, wq, bq, wk, bk, wv, bv, wo, bo, gamma, beta)

    assert out.shape == (B, N, d_model)
    max_err = float(jnp.max(jnp.abs(out - ref)))
    # bf16 MXU operands with f32 accumulation / f32 softmax stats & LayerNorm.
    assert jnp.allclose(out, ref, atol=5e-2, rtol=5e-2), f"max abs err {max_err}"

    print("KERNEL_OK")
</pallas_src>

<mosaic_0001>
module attributes {stable_mosaic.version = 11 : i64} {
  func.func @_attn_kernel(%arg0: i32, %arg1: i32, %arg2: i32, %arg3: memref<1x8x128xf32, #tpu.memory_space<vmem>>, %arg4: memref<1x8x128xbf16, #tpu.memory_space<vmem>>, %arg5: memref<1x8x128xbf16, #tpu.memory_space<vmem>>, %arg6: memref<128x128xbf16, #tpu.memory_space<vmem>>, %arg7: memref<1x128xf32, #tpu.memory_space<vmem>>, %arg8: memref<128x128xbf16, #tpu.memory_space<vmem>>, %arg9: memref<1x128xf32, #tpu.memory_space<vmem>>, %arg10: memref<1x128xf32, #tpu.memory_space<vmem>>, %arg11: memref<1x128xf32, #tpu.memory_space<vmem>>, %arg12: memref<1x8x128xf32, #tpu.memory_space<vmem>>, %arg13: memref<8x128xbf16, #tpu.memory_space<vmem>>, %arg14: memref<8x1xf32, #tpu.memory_space<vmem>>, %arg15: memref<8x1xf32, #tpu.memory_space<vmem>>, %arg16: memref<8x128xf32, #tpu.memory_space<vmem>>) attributes {dimension_semantics = [#tpu.dimension_semantics<parallel>, #tpu.dimension_semantics<parallel>, #tpu.dimension_semantics<arbitrary>], iteration_bounds = array<i64: 2, 1, 1>, scalar_prefetch = 0 : i64, scratch_operands = 4 : i64, tpu.core_type = #tpu.core_type<tc>, window_params = [{transform_indices = @transform_0, window_bounds = array<i64: 1, 8, 128>}, {transform_indices = @transform_1, window_bounds = array<i64: 1, 8, 128>}, {transform_indices = @transform_2, window_bounds = array<i64: 1, 8, 128>}, {pipeline_mode = #tpu.pipeline_mode<synchronous>, transform_indices = @transform_3, window_bounds = array<i64: 128, 128>}, {pipeline_mode = #tpu.pipeline_mode<synchronous>, transform_indices = @transform_4, window_bounds = array<i64: 1, 128>}, {pipeline_mode = #tpu.pipeline_mode<synchronous>, transform_indices = @transform_5, window_bounds = array<i64: 128, 128>}, {pipeline_mode = #tpu.pipeline_mode<synchronous>, transform_indices = @transform_6, window_bounds = array<i64: 1, 128>}, {pipeline_mode = #tpu.pipeline_mode<synchronous>, transform_indices = @transform_7, window_bounds = array<i64: 1, 128>}, {pipeline_mode = #tpu.pipeline_mode<synchronous>, transform_indices = @transform_8, window_bounds = array<i64: 1, 128>}, {transform_indices = @transform_9, window_bounds = array<i64: 1, 8, 128>}]} {
    %c0_i32 = arith.constant 0 : i32
    %0 = arith.cmpi eq, %arg2, %c0_i32 : i32
    %1 = arith.extui %0 : i1 to i32
    %c0_i32_0 = arith.constant 0 : i32
    %2 = arith.cmpi ne, %1, %c0_i32_0 : i32
    scf.if %2 {
      %c0_27 = arith.constant 0 : index
      %c0_28 = arith.constant 0 : index
      %c0_29 = arith.constant 0 : index
      %36 = vector.load %arg3[%c0_27, %c0_28, %c0_29] : memref<1x8x128xf32, #tpu.memory_space<vmem>>, vector<1x8x128xf32>
      %37 = vector.shape_cast %36 : vector<1x8x128xf32> to vector<8x128xf32>
      %38 = arith.truncf %37 : vector<8x128xf32> to vector<8x128xbf16>
      %c0_30 = arith.constant 0 : index
      %c0_31 = arith.constant 0 : index
      %39 = vector.load %arg6[%c0_30, %c0_31] : memref<128x128xbf16, #tpu.memory_space<vmem>>, vector<128x128xbf16>
      %cst_32 = arith.constant dense<0.000000e+00> : vector<8x128xf32>
      %40 = tpu.matmul %38, %39, %cst_32 {dimension_numbers = #tpu.dot_dimension_numbers<[1], [0], [0], [1], [0, 0, 1, 1], [], []>} : vector<8x128xbf16>, vector<128x128xbf16>, vector<8x128xf32> -> vector<8x128xf32>
      %c0_33 = arith.constant 0 : index
      %c0_34 = arith.constant 0 : index
      %41 = vector.load %arg7[%c0_33, %c0_34] : memref<1x128xf32, #tpu.memory_space<vmem>>, vector<1x128xf32>
      %42 = vector.broadcast %41 : vector<1x128xf32> to vector<8x128xf32>
      %43 = arith.addf %40, %42 : vector<8x128xf32>
      %cst_35 = arith.constant 0.176776692 : f32
      %44 = vector.broadcast %cst_35 : f32 to vector<8x128xf32>
      %45 = arith.mulf %43, %44 : vector<8x128xf32>
      %46 = arith.truncf %45 : vector<8x128xf32> to vector<8x128xbf16>
      %c0_36 = arith.constant 0 : index
      %c0_37 = arith.constant 0 : index
      %47 = vector.load %arg13[%c0_36, %c0_37] : memref<8x128xbf16, #tpu.memory_space<vmem>>, vector<8x128xbf16>
      tpu.vector_store %arg13[%c0_36, %c0_37], %46 {strides = array<i32>} : memref<8x128xbf16, #tpu.memory_space<vmem>>, vector<8x128xbf16>,
      %cst_38 = arith.constant 0xFF800000 : f32
      %48 = vector.broadcast %cst_38 : f32 to vector<8x1xf32>
      %c0_39 = arith.constant 0 : index
      %c0_40 = arith.constant 0 : index
      %49 = vector.load %arg14[%c0_39, %c0_40] : memref<8x1xf32, #tpu.memory_space<vmem>>, vector<8x1xf32>
      tpu.vector_store %arg14[%c0_39, %c0_40], %48 {strides = array<i32>} : memref<8x1xf32, #tpu.memory_space<vmem>>, vector<8x1xf32>,
      %cst_41 = arith.constant 0.000000e+00 : f32
      %50 = vector.broadcast %cst_41 : f32 to vector<8x1xf32>
      %c0_42 = arith.constant 0 : index
      %c0_43 = arith.constant 0 : index
      %51 = vector.load %arg15[%c0_42, %c0_43] : memref<8x1xf32, #tpu.memory_space<vmem>>, vector<8x1xf32>
      tpu.vector_store %arg15[%c0_42, %c0_43], %50 {strides = array<i32>} : memref<8x1xf32, #tpu.memory_space<vmem>>, vector<8x1xf32>,
      %cst_44 = arith.constant 0.000000e+00 : f32
      %52 = vector.broadcast %cst_44 : f32 to vector<8x128xf32>
      %c0_45 = arith.constant 0 : index
      %c0_46 = arith.constant 0 : index
      %53 = vector.load %arg16[%c0_45, %c0_46] : memref<8x128xf32, #tpu.memory_space<vmem>>, vector<8x128xf32>
      tpu.vector_store %arg16[%c0_45, %c0_46], %52 {strides = array<i32>} : memref<8x128xf32, #tpu.memory_space<vmem>>, vector<8x128xf32>,
    } else {
    }
    %c0 = arith.constant 0 : index
    %c0_1 = arith.constant 0 : index
    %c0_2 = arith.constant 0 : index
    %3 = vector.load %arg4[%c0, %c0_1, %c0_2] : memref<1x8x128xbf16, #tpu.memory_space<vmem>>, vector<1x8x128xbf16>
    %4 = vector.shape_cast %3 : vector<1x8x128xbf16> to vector<8x128xbf16>
    %c0_3 = arith.constant 0 : index
    %c0_4 = arith.constant 0 : index
    %c0_5 = arith.constant 0 : index
    %5 = vector.load %arg5[%c0_3, %c0_4, %c0_5] : memref<1x8x128xbf16, #tpu.memory_space<vmem>>, vector<1x8x128xbf16>
    %6 = vector.shape_cast %5 : vector<1x8x128xbf16> to vector<8x128xbf16>
    %c0_6 = arith.constant 0 : index
    %c0_7 = arith.constant 0 : index
    %7 = vector.load %arg13[%c0_6, %c0_7] : memref<8x128xbf16, #tpu.memory_space<vmem>>, vector<8x128xbf16>
    %cst = arith.constant dense<0.000000e+00> : vector<8x8xf32>
    %8 = tpu.matmul %7, %4, %cst {dimension_numbers = #tpu.dot_dimension_numbers<[1], [1], [0], [0], [0, 0, 1, 0], [], []>} : vector<8x128xbf16>, vector<8x128xbf16>, vector<8x8xf32> -> vector<8x8xf32>
    %c0_8 = arith.constant 0 : index
    %c0_9 = arith.constant 0 : index
    %9 = vector.load %arg14[%c0_8, %c0_9] : memref<8x1xf32, #tpu.memory_space<vmem>>, vector<8x1xf32>
    %cst_10 = arith.constant dense<0xFF800000> : vector<8xf32>
    %10 = vector.multi_reduction <maximumf>, %8, %cst_10 [1] : vector<8x8xf32> to vector<8xf32>
    %11 = vector.shape_cast %10 : vector<8xf32> to vector<8x1xf32>
    %12 = arith.maximumf %9, %11 : vector<8x1xf32>
    %c0_11 = arith.constant 0 : index
    %c0_12 = arith.constant 0 : index
    %13 = vector.load %arg14[%c0_11, %c0_12] : memref<8x1xf32, #tpu.memory_space<vmem>>, vector<8x1xf32>
    %14 = arith.subf %13, %12 : vector<8x1xf32>
    %15 = math.exp %14 : vector<8x1xf32>
    %16 = vector.broadcast %12 : vector<8x1xf32> to vector<8x8xf32>
    %17 = arith.subf %8, %16 : vector<8x8xf32>
    %18 = math.exp %17 : vector<8x8xf32>
    %c0_13 = arith.constant 0 : index
    %c0_14 = arith.constant 0 : index
    %19 = vector.load %arg15[%c0_13, %c0_14] : memref<8x1xf32, #tpu.memory_space<vmem>>, vector<8x1xf32>
    %20 = arith.mulf %15, %19 : vector<8x1xf32>
    %cst_15 = arith.constant dense<0.000000e+00> : vector<8xf32>
    %21 = vector.multi_reduction <add>, %18, %cst_15 [1] : vector<8x8xf32> to vector<8xf32>
    %22 = vector.shape_cast %21 : vector<8xf32> to vector<8x1xf32>
    %23 = arith.addf %20, %22 : vector<8x1xf32>
    %c0_16 = arith.constant 0 : index
    %c0_17 = arith.constant 0 : index
    %24 = vector.load %arg15[%c0_16, %c0_17] : memref<8x1xf32, #tpu.memory_space<vmem>>, vector<8x1xf32>
    tpu.vector_store %arg15[%c0_16, %c0_17], %23 {strides = array<i32>} : memref<8x1xf32, #tpu.memory_space<vmem>>, vector<8x1xf32>,
    %c0_18 = arith.constant 0 : index
    %c0_19 = arith.constant 0 : index
    %25 = vector.load %arg16[%c0_18, %c0_19] : memref<8x128xf32, #tpu.memory_space<vmem>>, vector<8x128xf32>
    %26 = vector.broadcast %15 : vector<8x1xf32> to vector<8x128xf32>
    %27 = arith.mulf %26, %25 : vector<8x128xf32>
    %28 = arith.truncf %18 : vector<8x8xf32> to vector<8x8xbf16>
    %cst_20 = arith.constant dense<0.000000e+00> : vector<8x128xf32>
    %29 = tpu.matmul %28, %6, %cst_20 {dimension_numbers = #tpu.dot_dimension_numbers<[1], [0], [0], [1], [0, 0, 1, 1], [], []>} : vector<8x8xbf16>, vector<8x128xbf16>, vector<8x128xf32> -> vector<8x128xf32>
    %30 = arith.addf %27, %29 : vector<8x128xf32>
    %c0_21 = arith.constant 0 : index
    %c0_22 = arith.constant 0 : index
    %31 = vector.load %arg16[%c0_21, %c0_22] : memref<8x128xf32, #tpu.memory_space<vmem>>, vector<8x128xf32>
    tpu.vector_store %arg16[%c0_21, %c0_22], %30 {strides = array<i32>} : memref<8x128xf32, #tpu.memory_space<vmem>>, vector<8x128xf32>,
    %c0_23 = arith.constant 0 : index
    %c0_24 = arith.constant 0 : index
    %32 = vector.load %arg14[%c0_23, %c0_24] : memref<8x1xf32, #tpu.memory_space<vmem>>, vector<8x1xf32>
    tpu.vector_store %arg14[%c0_23, %c0_24], %12 {strides = array<i32>} : memref<8x1xf32, #tpu.memory_space<vmem>>, vector<8x1xf32>,
    %c0_i32_25 = arith.constant 0 : i32
    %33 = arith.cmpi eq, %arg2, %c0_i32_25 : i32
    %34 = arith.extui %33 : i1 to i32
    %c0_i32_26 = arith.constant 0 : i32
    %35 = arith.cmpi ne, %34, %c0_i32_26 : i32
    scf.if %35 {
      %c0_27 = arith.constant 0 : index
      %c0_28 = arith.constant 0 : index
      %36 = vector.load %arg16[%c0_27, %c0_28] : memref<8x128xf32, #tpu.memory_space<vmem>>, vector<8x128xf32>
      %c0_29 = arith.constant 0 : index
      %c0_30 = arith.constant 0 : index
      %37 = vector.load %arg15[%c0_29, %c0_30] : memref<8x1xf32, #tpu.memory_space<vmem>>, vector<8x1xf32>
      %38 = tpu.reciprocal %37 {approx = true} : vector<8x1xf32> -> vector<8x1xf32>
      %39 = vector.broadcast %38 : vector<8x1xf32> to vector<8x128xf32>
      %40 = arith.mulf %36, %39 : vector<8x128xf32>
      %41 = arith.truncf %40 : vector<8x128xf32> to vector<8x128xbf16>
      %c0_31 = arith.constant 0 : index
      %c0_32 = arith.constant 0 : index
      %42 = vector.load %arg8[%c0_31, %c0_32] : memref<128x128xbf16, #tpu.memory_space<vmem>>, vector<128x128xbf16>
      %cst_33 = arith.constant dense<0.000000e+00> : vector<8x128xf32>
      %43 = tpu.matmul %41, %42, %cst_33 {dimension_numbers = #tpu.dot_dimension_numbers<[1], [0], [0], [1], [0, 0, 1, 1], [], []>} : vector<8x128xbf16>, vector<128x128xbf16>, vector<8x128xf32> -> vector<8x128xf32>
      %c0_34 = arith.constant 0 : index
      %c0_35 = arith.constant 0 : index
      %44 = vector.load %arg9[%c0_34, %c0_35] : memref<1x128xf32, #tpu.memory_space<vmem>>, vector<1x128xf32>
      %45 = vector.broadcast %44 : vector<1x128xf32> to vector<8x128xf32>
      %46 = arith.addf %43, %45 : vector<8x128xf32>
      %c0_36 = arith.constant 0 : index
      %c0_37 = arith.constant 0 : index
      %c0_38 = arith.constant 0 : index
      %47 = vector.load %arg3[%c0_36, %c0_37, %c0_38] : memref<1x8x128xf32, #tpu.memory_space<vmem>>, vector<1x8x128xf32>
      %48 = vector.shape_cast %47 : vector<1x8x128xf32> to vector<8x128xf32>
      %49 = arith.addf %48, %46 : vector<8x128xf32>
      %cst_39 = arith.constant dense<0.000000e+00> : vector<8xf32>
      %50 = vector.multi_reduction <add>, %49, %cst_39 [1] : vector<8x128xf32> to vector<8xf32>
      %51 = vector.shape_cast %50 : vector<8xf32> to vector<8x1xf32>
      %cst_40 = arith.constant 3.125000e-02 : f32
      %52 = vector.broadcast %cst_40 : f32 to vector<8x1xf32>
      %53 = arith.mulf %51, %52 : vector<8x1xf32>
      %54 = vector.broadcast %53 : vector<8x1xf32> to vector<8x128xf32>
      %55 = arith.subf %49, %54 : vector<8x128xf32>
      %56 = tpu.iota {dimensions = array<i32: 1>} : vector<1x128xi32>
      %c32_i32 = arith.constant 32 : i32
      %57 = vector.broadcast %c32_i32 : i32 to vector<1x128xi32>
      %58 = arith.cmpi slt, %56, %57 : vector<1x128xi32>
      %cst_41 = arith.constant 0.000000e+00 : f32
      %59 = vector.shape_cast %58 : vector<1x128xi1> to vector<1x128xi1>
      %60 = vector.broadcast %59 : vector<1x128xi1> to vector<8x128xi1>
      %61 = vector.broadcast %cst_41 : f32 to vector<8x128xf32>
      %62 = arith.select %60, %55, %61 : vector<8x128xi1>, vector<8x128xf32>
      %63 = arith.mulf %62, %62 : vector<8x128xf32>
      %cst_42 = arith.constant dense<0.000000e+00> : vector<8xf32>
      %64 = vector.multi_reduction <add>, %63, %cst_42 [1] : vector<8x128xf32> to vector<8xf32>
      %65 = vector.shape_cast %64 : vector<8xf32> to vector<8x1xf32>
      %cst_43 = arith.constant 3.125000e-02 : f32
      %66 = vector.broadcast %cst_43 : f32 to vector<8x1xf32>
      %67 = arith.mulf %65, %66 : vector<8x1xf32>
      %cst_44 = arith.constant 9.99999974E-6 : f32
      %68 = vector.broadcast %cst_44 : f32 to vector<8x1xf32>
      %69 = arith.addf %67, %68 : vector<8x1xf32>
      %70 = math.rsqrt %69 : vector<8x1xf32>
      %71 = vector.broadcast %70 : vector<8x1xf32> to vector<8x128xf32>
      %72 = arith.mulf %62, %71 : vector<8x128xf32>
      %c0_45 = arith.constant 0 : index
      %c0_46 = arith.constant 0 : index
      %73 = vector.load %arg10[%c0_45, %c0_46] : memref<1x128xf32, #tpu.memory_space<vmem>>, vector<1x128xf32>
      %74 = vector.broadcast %73 : vector<1x128xf32> to vector<8x128xf32>
      %75 = arith.mulf %72, %74 : vector<8x128xf32>
      %c0_47 = arith.constant 0 : index
      %c0_48 = arith.constant 0 : index
      %76 = vector.load %arg11[%c0_47, %c0_48] : memref<1x128xf32, #tpu.memory_space<vmem>>, vector<1x128xf32>
      %77 = vector.broadcast %76 : vector<1x128xf32> to vector<8x128xf32>
      %78 = arith.addf %75, %77 : vector<8x128xf32>
      %c0_49 = arith.constant 0 : index
      %c0_50 = arith.constant 0 : index
      %c0_51 = arith.constant 0 : index
      %79 = vector.load %arg12[%c0_49, %c0_50, %c0_51] : memref<1x8x128xf32, #tpu.memory_space<vmem>>, vector<1x8x128xf32>
      %80 = vector.shape_cast %79 : vector<1x8x128xf32> to vector<8x128xf32>
      %81 = vector.shape_cast %78 : vector<8x128xf32> to vector<1x8x128xf32>
      tpu.vector_store %arg12[%c0_49, %c0_50, %c0_51], %81 {strides = array<i32>} : memref<1x8x128xf32, #tpu.memory_space<vmem>>, vector<1x8x128xf32>,
    } else {
    }
    return
  }
  func.func @transform_0(%arg0: i32, %arg1: i32, %arg2: i32) -> (i32, i32, i32) {
    %c0_i32 = arith.constant 0 : i32
    %c0_i32_0 = arith.constant 0 : i32
    return %arg0, %arg1, %c0_i32 : i32, i32, i32
  }
  func.func @transform_1(%arg0: i32, %arg1: i32, %arg2: i32) -> (i32, i32, i32) {
    %c0_i32 = arith.constant 0 : i32
    %c0_i32_0 = arith.constant 0 : i32
    return %arg0, %arg2, %c0_i32 : i32, i32, i32
  }
  func.func @transform_2(%arg0: i32, %arg1: i32, %arg2: i32) -> (i32, i32, i32) {
    %c0_i32 = arith.constant 0 : i32
    %c0_i32_0 = arith.constant 0 : i32
    return %arg0, %arg2, %c0_i32 : i32, i32, i32
  }
  func.func @transform_3(%arg0: i32, %arg1: i32, %arg2: i32) -> (i32, i32) {
    %c0_i32 = arith.constant 0 : i32
    %c0_i32_0 = arith.constant 0 : i32
    %c0_i32_1 = arith.constant 0 : i32
    return %c0_i32, %c0_i32_0 : i32, i32
  }
  func.func @transform_4(%arg0: i32, %arg1: i32, %arg2: i32) -> (i32, i32) {
    %c0_i32 = arith.constant 0 : i32
    %c0_i32_0 = arith.constant 0 : i32
    %c0_i32_1 = arith.constant 0 : i32
    return %c0_i32, %c0_i32_0 : i32, i32
  }
  func.func @transform_5(%arg0: i32, %arg1: i32, %arg2: i32) -> (i32, i32) {
    %c0_i32 = arith.constant 0 : i32
    %c0_i32_0 = arith.constant 0 : i32
    %c0_i32_1 = arith.constant 0 : i32
    return %c0_i32, %c0_i32_0 : i32, i32
  }
  func.func @transform_6(%arg0: i32, %arg1: i32, %arg2: i32) -> (i32, i32) {
    %c0_i32 = arith.constant 0 : i32
    %c0_i32_0 = arith.constant 0 : i32
    %c0_i32_1 = arith.constant 0 : i32
    return %c0_i32, %c0_i32_0 : i32, i32
  }
  func.func @transform_7(%arg0: i32, %arg1: i32, %arg2: i32) -> (i32, i32) {
    %c0_i32 = arith.constant 0 : i32
    %c0_i32_0 = arith.constant 0 : i32
    %c0_i32_1 = arith.constant 0 : i32
    return %c0_i32, %c0_i32_0 : i32, i32
  }
  func.func @transform_8(%arg0: i32, %arg1: i32, %arg2: i32) -> (i32, i32) {
    %c0_i32 = arith.constant 0 : i32
    %c0_i32_0 = arith.constant 0 : i32
    %c0_i32_1 = arith.constant 0 : i32
    return %c0_i32, %c0_i32_0 : i32, i32
  }
  func.func @transform_9(%arg0: i32, %arg1: i32, %arg2: i32) -> (i32, i32, i32) {
    %c0_i32 = arith.constant 0 : i32
    %c0_i32_0 = arith.constant 0 : i32
    return %arg0, %arg1, %c0_i32 : i32, i32, i32
  }
}

</mosaic_0001>

<bundles_post_ra>
// kernel: tpu_custom_call.1
= control target key start
LH: loop header
LB: loop body
LE: loop exit
PB: predicated region body
PF: predicated region fallthrough
CT: control target
= control target key end

     0   :  { %s1863_s0 = inlined_call_operand.hbm [shape: f32[2,8,128], index: 0, kind: input, shape index: {}]   ;;  %s1864_s1 = inlined_call_operand.hbm [shape: bf16[2,8,128], index: 1, kind: input, shape index: {}]   ;;  %s1865_s2 = inlined_call_operand.hbm [shape: bf16[2,8,128], index: 2, kind: input, shape index: {}]   ;;  %s1866_s3 = inlined_call_operand.hbm [shape: bf16[128,128], index: 3, kind: input, shape index: {}]   ;;  %s1867_s4 = inlined_call_operand.vmem [shape: f32[1,128], index: 4, kind: input, shape index: {}]   ;;  %s1868_s5 = inlined_call_operand.hbm [shape: bf16[128,128], index: 5, kind: input, shape index: {}]   ;;  %s1869_s6 = inlined_call_operand.vmem [shape: f32[1,128], index: 6, kind: input, shape index: {}]   ;;  %s1870_s7 = inlined_call_operand.vmem [shape: f32[1,128], index: 7, kind: input, shape index: {}]   ;;  %s1871_s8 = inlined_call_operand.vmem [shape: f32[1,128], index: 8, kind: input, shape index: {}]   ;;  %s1872_s9 = inlined_call_operand.hbm [shape: f32[2,8,128], index: 9, kind: output, shape index: {}]  }
   0x1   :  { %1886 = sst [smem:[#allocation25_spill]] %s1864_s1 }
   0x2   :  { %1887 = sst [smem:[#allocation26_spill]] %s1865_s2 }
   0x3   :  { %1888 = sst [smem:[#allocation27_spill]] %s1866_s3 }
   0x4   :  { %1889 = sst [smem:[#allocation28_spill]] %s1870_s7 }
   0x5   :  { %1890 = sst [smem:[#allocation29_spill]] %s1871_s8 }
   0x6   :  { %1891 = sst [smem:[#allocation30_spill]] %s1872_s9 }
   0x7   :  { %14 = vsyncpa [#allocation7], 0 }
   0x8   :  { %16 = vsyncpa [#allocation7 + $0x1], 0 }
   0x9   :  { %17 = vsyncpa [#allocation10], 0 }
   0xa   :  { %19 = vsyncpa [#allocation10 + $0x1], 0 }
   0xb   :  { %20 = vsyncpa [#allocation13], 0 }
   0xc   :  { %21 = vsyncpa [#allocation8], 0 }
   0xd   :  { %23 = vsyncpa [#allocation8 + $0x1], 0  ;;  %s1582_s30 = smov 0   ;;  %s1584_s10 = smov 0  }
   0xe   :  { %s1586_s11 = smov 0   ;;  %s1588_s12 = smov 0  }
   0xf   :  { %s1590_s13 = smov 0   ;;  %s1592_s14 = smov 0  }
  0x10 LB: > { %1892 = sst [smem:[#allocation20_spill]] %s1498_s30  ;;  %s1613_s15 = sadd.s32 4294967295, %s1518_s14   ;;  %s1518_s14 = sphi %s1592_s14, %s29_s14   ;;  %s1514_s13 = sphi %s1590_s13, %s1930_s13   ;;  %s1510_s12 = sphi %s1588_s12, %s1929_s12   ;;  %s1506_s11 = sphi %s1586_s11, %s1928_s11   ;;  %s1502_s10 = sphi %s1584_s10, %s1927_s10   ;;  %s1498_s30 = sphi %s1582_s30, %s1926_s30  }
  0x11   : > { %s1052_s16 = sadd.s32 4294967294, %s1518_s14   ;;  %p70_p0 = scmp.ne.s32.totalorder %s1502_s10, %s1498_s30 }
  0x12   : > { %p1873_p1 = scmp.eq.s32.totalorder %s1613_s15, 0  ;;  %p284_p3 = scmp.eq.s32.totalorder %s1052_s16, 1 }
  0x13   : > { %p1053_p5 = scmp.ge.s32.totalorder %s1518_s14, 1  ;;  %p291_p7 = scmp.lt.s32.totalorder %s1518_s14, 3 }
  0x14   : > { %p1622_p4 = por %p1873_p1, %p70_p0  ;;  %p1627_p6 = por %p284_p3, %p70_p0 }
  0x15   : > { %p1632_p8 = pnand %p1053_p5, %p291_p7  ;;  %s1520_s20 = smov [#allocation12]  }
  0x16   : > { %s1894_s18 = scalar_select %p1627_p6, 1, 0 }
  0x17   : > { %s303_s21 = sshll.u32 %s1520_s20, 4  ;;  %p1185_p9 = pneg %p1632_p8  ;;  %s304_s21 = int_to_ptr.vmem [resolvable:$true] %s303_s21 }
  0x18   : > { %1895 = sst [smem:[#allocation21_spill]] %s1894_s18  ;;  %s48_s23 = sadd.s32 1, %s1514_s13 }
  0x19   : > { %p1641_p11 = pnand %p1185_p9, %p1873_p1  ;;  %s1305_s24 = scalar_lea.vmem %s304_s21, 1024 }
  0x1a   : > { %p1306_p13 = scmp.ne.s32.totalorder %s304_s21, %s1305_s24  ;;  %p1313_p5 = scmp.lt.s32.totalorder %s304_s21, %s304_s21 }
  0x1b   : > { %p1882_p12 = pneg %p1641_p11  ;;  %p1314_p7 = scmp.lt.s32.totalorder %s1305_s24, %s1305_s24 }
  0x1d   : > { %p1308_p0 = pnand %p1306_p13, %p1882_p12  ;;  %p1315_p2 = por %p1314_p7, %p1313_p5 }
  0x1f   : > { %p1309_p3 = pneg %p1308_p0 }
  0x21   : > { %p1316_p10 = pnand %p1315_p2, %p1309_p3 }
  0x23   : > { %1319 = shalt.err (!%p1316_p10)
}
  0x24   : > { %s1874_s25 = smov 64   ;;  %s1875_s26 = smov 4  }
  0x25   : > { %s1898_s3 = sld [smem:[#allocation27_spill]]  ;;  %p50_p2 = scmp.ge.s32.totalorder %s48_s23, 2 }
  0x26   : > { %s57_s29 = sadd.s32 1, %s1506_s11  ;;  %p64_p9 = scmp.ne.s32.totalorder %s1506_s11, %s1502_s10 }
  0x27   : > { %p65_p10 = scmp.eq.s32.totalorder %s1518_s14, 0  ;;  %s1932_s23 = smov (%p50_p2, %s48_s23), 0 }
  0x28   : > { %1899 = sst [smem:[#allocation22_spill]] %s1932_s23  ;;  %p1900_p0 = scmp.eq.s32.totalorder %s1613_s15, 1 }
  0x29   : > { %p66_p13 = por %p65_p10, %p64_p9  ;;  %s52_s20 = ssub.s32 %s1514_s13, %s1932_s23 }
  0x2a   : > { %p1667_p3 = por %p1900_p0, %p64_p9  ;;  %p1208_p5 = scmp.lt.s32.totalorder %s1518_s14, 2 }
  0x2b   : > { %1188 = dma.hbm_to_vmem [thread:$0]  (!%p1641_p11), %s1898_s3, 1024, %s304_s21, [#allocation13], %s1874_s25, %s1874_s25, %s1875_s26  }
  0x2c   : > { %s1901_s16 = scalar_select %p1667_p3, 1, 0 }
  0x2d   : > { %p55_p7 = scmp.eq.s32.totalorder %s52_s20, 0  ;;  %s1675_s24 = sand.u32 1, %s1506_s11  }
  0x2e   : > { %1902 = sst [smem:[#allocation23_spill]] %s1901_s16  ;;  %p1677_p1 = pnand %p1208_p5, %p66_p13 }
  0x2f   : > { %s361_s27 = sand.u32 1, %s1518_s14   ;;  %s1885_s25 = sshll.u32 %s1675_s24, 2 }
  0x30   : > { %s1683_s28 = scalar_select %p55_p7, %s1506_s11, %s57_s29  }
  0x31   : > { %s1060_s26 = sshll.u32 %s1514_s13, 6  ;;  %s1905_s1 = sld [smem:[#allocation25_spill]] }
  0x32   : > { %1904 = sst [smem:[#allocation24_spill]] %s1683_s28  ;;  %s365_s20 = scalar_lea.vmem [#allocation9], %s1885_s25 }
  0x33   : > { %s373_s30 = sshll.u32 %s365_s20, 4  ;;  %s1906_s2 = sld [smem:[#allocation26_spill]]  ;;  %s374_s30 = int_to_ptr.vmem [resolvable:$true] %s373_s30 }
  0x34   : > { %s1697_s16 = scalar_lea.sflag [#allocation10], %s361_s27  ;;  %p1883_p2 = pneg %p1677_p1 }
  0x35   : > { %s1333_s29 = scalar_lea.vmem %s374_s30, 64  ;;  %s1523_s3 = smov [#allocation9]  }
  0x36   : > { %p1334_p9 = scmp.ne.s32.totalorder %s374_s30, %s1333_s29  ;;  %s1338_s18 = sshll.u32 %s1523_s3, 4  ;;  %s1339_s18 = int_to_ptr.vmem [resolvable:$false] %s1338_s18 }
  0x37   : > { %s371_s23 = scalar_lea.hbm %s1905_s1, %s1060_s26  ;;  %s1340_s20 = scalar_lea.vmem %s1339_s18, 128 }
  0x38   : > { %p1336_p10 = pnand %p1334_p9, %p1883_p2  ;;  %p1341_p0 = scmp.lt.s32.totalorder %s374_s30, %s1339_s18 }
  0x39   : > { %s1695_s7 = scalar_lea.hbm %s1906_s2, %s1060_s26  ;;  %p1342_p5 = scmp.lt.s32.totalorder %s1340_s20, %s1333_s29 }
  0x3a   : > { %p1337_p13 = pneg %p1336_p10 }
  0x3b   : > { %p1343_p7 = por %p1342_p5, %p1341_p0 }
  0x3d   : > { %p1344_p12 = pnand %p1343_p7, %p1337_p13 }
  0x3f   : > { %1347 = shalt.err (!%p1344_p12)
}
  0x40   : > { %1198 = dma.hbm_to_vmem [thread:$0]  (!%p1677_p1), %s371_s23, 64, %s374_s30, %s1697_s16  }
  0x41   : > { %s1524_s8 = smov [#allocation14]   ;;  %s1057_s26 = sshll.u32 %s1675_s24, 3 }
  0x42   : > { %s319_s9 = sshll.u32 %s1524_s8, 4  ;;  %p1907_p10 = pneg %p1641_p11  ;;  %s320_s9 = int_to_ptr.vmem [resolvable:$true] %s319_s9 }
  0x43   : > { %s1359_s27 = scalar_lea.vmem %s320_s9, 1024  ;;  %p1367_p3 = scmp.lt.s32.totalorder %s320_s9, %s320_s9 }
  0x44   : > { %p1360_p9 = scmp.ne.s32.totalorder %s320_s9, %s1359_s27  ;;  %p1368_p0 = scmp.lt.s32.totalorder %s1359_s27, %s1359_s27 }
  0x46   : > { %p1362_p2 = pnand %p1360_p9, %p1907_p10  ;;  %p1369_p13 = por %p1368_p0, %p1367_p3 }
  0x48   : > { %p1363_p6 = pneg %p1362_p2 }
  0x4a   : > { %p1370_p12 = pnand %p1369_p13, %p1363_p6 }
  0x4c   : > { %1373 = shalt.err (!%p1370_p12)
}
  0x4d   : > { %s1908_s29 = smov 4   ;;  %s1909_s3 = smov 64  }
  0x4e   : > { %1191 = dma.hbm_to_vmem [thread:$0]  (!%p1641_p11), %s1868_s5, 1024, %s320_s9, [#allocation13], %s1909_s3, %s1909_s3, %s1908_s29  }
  0x4f   : > { %s1058_s18 = sshll.u32 %s1514_s13, 7  ;;  %s346_s20 = scalar_lea.vmem [#allocation6], %s1057_s26 }
  0x50   : > { %s354_s8 = sshll.u32 %s346_s20, 4  ;;  %s352_s1 = scalar_lea.hbm %s1863_s0, %s1058_s18  ;;  %s355_s8 = int_to_ptr.vmem [resolvable:$true] %s354_s8 }
  0x51   : > { %s343_s2 = scalar_lea.sflag [#allocation7], %s1675_s24  ;;  %s1387_s22 = scalar_lea.vmem %s355_s8, 128 }
  0x52   : > { %p1388_p6 = scmp.ne.s32.totalorder %s355_s8, %s1387_s22  ;;  %p1910_p3 = pneg %p1677_p1 }
  0x53   : > { %s1525_s30 = smov [#allocation6]  }
  0x54   : > { %p1390_p2 = pnand %p1388_p6, %p1910_p3  ;;  %s1392_s23 = sshll.u32 %s1525_s30, 4  ;;  %s1393_s23 = int_to_ptr.vmem [resolvable:$false] %s1392_s23 }
  0x55   : > { %s1394_s28 = scalar_lea.vmem %s1393_s23, 256  ;;  %p1395_p11 = scmp.lt.s32.totalorder %s355_s8, %s1393_s23 }
  0x56   : > { %p1391_p5 = pneg %p1390_p2  ;;  %p1396_p7 = scmp.lt.s32.totalorder %s1394_s28, %s1387_s22 }
  0x58   : > { %p1397_p9 = por %p1396_p7, %p1395_p11 }
  0x5a   : > { %p1398_p10 = pnand %p1397_p9, %p1391_p5 }
  0x5c   : > { %1401 = shalt.err (!%p1398_p10)
}
  0x5d   : > { %1195 = dma.hbm_to_vmem [thread:$0]  (!%p1677_p1), %s352_s1, 128, %s355_s8, %s343_s2  }
  0x5e   : > { %s1911_s25 = sshll.u32 %s1675_s24, 2  ;;  %p1912_p13 = pmov %p1910_p3 }
  0x5f   : > { %s384_s9 = scalar_lea.vmem [#allocation11], %s1911_s25  ;;  %s1526_s3 = smov [#allocation11]  }
  0x60   : > { %s392_s26 = sshll.u32 %s384_s9, 4  ;;  %s1420_s28 = sshll.u32 %s1526_s3, 4  ;;  %s393_s26 = int_to_ptr.vmem [resolvable:$true] %s392_s26  ;;  %s1421_s28 = int_to_ptr.vmem [resolvable:$false] %s1420_s28 }
  0x61   : > { %s1415_s29 = scalar_lea.vmem %s393_s26, 64  ;;  %s1422_s18 = scalar_lea.vmem %s1421_s28, 128 }
  0x62   : > { %p1416_p0 = scmp.ne.s32.totalorder %s393_s26, %s1415_s29  ;;  %p1423_p3 = scmp.lt.s32.totalorder %s393_s26, %s1421_s28 }
  0x63   : > { %p1424_p2 = scmp.lt.s32.totalorder %s1422_s18, %s1415_s29 }
  0x64   : > { %p1418_p12 = pnand %p1416_p0, %p1912_p13 }
  0x65   : > { %p1425_p5 = por %p1424_p2, %p1423_p3 }
  0x66   : > { %p1419_p6 = pneg %p1418_p12 }
  0x68   : > { %p1426_p11 = pnand %p1425_p5, %p1419_p6 }
  0x6a   : > { %1429 = shalt.err (!%p1426_p11)
}
  0x6b   : > { %1201 = dma.hbm_to_vmem [thread:$0]  (!%p1677_p1), %s1695_s7, 64, %s393_s26, %s1697_s16  }
  0x6c   : > { %401 = sbr.rel (%p1632_p8) target bundleno = 1645 (0x66d), region = 56  ;;  %s1741_s1 = sand.u32 (!%p1632_p8), 1, %s1502_s10  }
  0x6d   : > { %s1064_s2 = sshll.u32 (!%p1632_p8), %s1741_s1, 3  ;;  %s404_s24 = scalar_lea.sflag (!%p1632_p8), [#allocation7], %s1741_s1 }
  0x6e   : > { %s1747_s20 = scalar_lea.vmem (!%p1632_p8), [#allocation6], %s1064_s2 }
  0x71   : > { %1481 = dma.done.wait (%p1622_p4), %s404_s24, 128  }
  0x72   : > { %1483 = vsyncadd (%p1622_p4), %s404_s24, 4294967168  ;;  %s412_s7 = sand.u32 1, %s1613_s15   ;;  %s1065_s19 = sshll.u32 %s1741_s1, 2 }
  0x73   : > { %s413_s16 = scalar_lea.sflag [#allocation10], %s412_s7  ;;  %s1755_s21 = scalar_lea.vmem [#allocation9], %s1065_s19 }
  0x74   : > { %1485 = dma.done.wait (%p1622_p4), %s413_s16, 128  }
  0x75   : > { %1487 = vsyncadd (%p1622_p4), %s413_s16, 4294967168  ;;  %s1761_s8 = scalar_lea.vmem [#allocation11], %s1065_s19  ;;  %p1913_p1 = scmp.eq.s32.totalorder %s1613_s15, 0 }
  0x77   : > { %1489 = dma.done.wait (%p1913_p1), [#allocation13], 2048   ;;  %p1914_p8 = pmov %p1913_p1 }
  0x78   : > { %v1527_v0 = vmov 0.0   ;;  %vm1528_vm0 = vmmov 0   ;;  %v1270_v1 = vld [vmem:[#allocation12 + $0x38] sm:$0xff]   ;;  %v1271_v2 = vld [vmem:[#allocation12 + $0x30] sm:$0xff]   ;;  %v1272_v3 = vld [vmem:[#allocation12 + $0x28] sm:$0xff]   ;;  %vm599_vm1 = vcmask 7168  }
  0x79   : > { %1491 = vsyncadd (%p1914_p8), [#allocation13], 4294965248  ;;  %1117 = vmatprep.subr.bf16.mxu0 %v1527_v0  ;;  %1133 = vmatprep.mubr.msk.bf16.mxu0 %vm1528_vm0, %v1527_v0  ;;  %v1273_v4 = vld [vmem:[#allocation12 + $0x20] sm:$0xff]   ;;  %v1274_v5 = vld [vmem:[#allocation12 + $0x18] sm:$0xff]   ;;  %v1529_v21 = vmov -inf   ;;  %601 = vst.msk [vmem:[#allocation4] sm:$0xff] %vm599_vm1, %v1527_v0 }
  0x7a   : > { %1143 = vmatprep.subr.bf16.mxu1 %v1527_v0  ;;  %1145 = vmatprep.mubr.msk.bf16.mxu1 %vm1528_vm0, %v1527_v0  ;;  %v1275_v6 = vld [vmem:[#allocation12 + $0x10] sm:$0xff]   ;;  %v1276_v7 = vld [vmem:[#allocation12 + $0x8] sm:$0xff]   ;;  %v1277_v8 = vld [vmem:[#allocation12] sm:$0xff]   ;;  %600 = vst.msk [vmem:[#allocation3] sm:$0xff] %vm599_vm1, %v1529_v21  ;;  %vm647_vm2 = vcmask 64512   ;;  %v1530_v27 = vmov 0  }
  0x7b   : > { %1118 = vmatpush3.bf16.msra.mxu0 %v1270_v1  ;;  %v1780_v9 = vld [vmem:[%s1747_s20] sm:$0xff]  ;;  %v603_v11 = vld [vmem:[%s1755_s21] sm:$0xf]  ;;  %1268 = vset.pattern.permute.xlu0 %v1530_v27  ;;  %v604_v32 = vld [vmem:[%s1761_s8] sm:$0xf]  ;;  %vm682_vm3 = vcmask 1043456  }
  0x7c   : > { %1119 = vmatprep.subr.bf16.mxu0 %v1527_v0  ;;  %v484_v10 = vpack.c.bf16 %v1780_v9, %v1780_v9  ;;  %v1070_v12 = vld [vmem:[%s1867_s4] ss:$0 sm:$0xff]  ;;  %1269 = vset.pattern.permute.xlu1 %v1530_v27  ;;  %v684_v33 = vsel %vm682_vm3, %v604_v32, 0  ;;  %v1278_v42 = vld [vmem:[#allocation14 + $0x38] sm:$0xff]   ;;  %v1279_v43 = vld [vmem:[#allocation14 + $0x30] sm:$0xff]   ;;  %s1915_s30 = sld [smem:[#allocation23_spill]] }
  0x7d   : > { %1144 = vmatpush3.bf16.msra.mxu1 %v684_v33  ;;  %v1280_v44 = vld [vmem:[#allocation14 + $0x28] sm:$0xff]   ;;  %v1281_v45 = vld [vmem:[#allocation14 + $0x20] sm:$0xff]   ;;  %v1282_v46 = vld [vmem:[#allocation14 + $0x18] sm:$0xff]   ;;  %s1916_s9 = sld [smem:[#allocation28_spill]]  ;;  %s1092_s28 = sshll.u32 %s1510_s12, 7 }
  0x7e   : > { %1149 = vmatprep.subr.bf16.mxu1 %v1527_v0  ;;  %v1283_v47 = vld [vmem:[#allocation14 + $0x10] sm:$0xff]   ;;  %v1284_v48 = vld [vmem:[#allocation14 + $0x8] sm:$0xff]   ;;  %v1285_v54 = vld [vmem:[#allocation14] sm:$0xff]   ;;  %s1917_s3 = sld [smem:[#allocation29_spill]]  ;;  %s477_s18 = scalar_lea.vmem [#allocation15], %s1064_s2 }
  0x7f   : > { %1120 = vmatpush3.bf16.msra.mxu0 %v1271_v2  ;;  %v1080_v2 = vld [vmem:[%s1869_s6] ss:$0 sm:$0xff]  ;;  %s904_s24 = sshll.u32 %s477_s18, 4  ;;  %s1918_s19 = sld [smem:[#allocation30_spill]]  ;;  %s905_s24 = int_to_ptr.vmem [resolvable:$true] %s904_s24 }
  0x80   : > { %1121 = vmatprep.subr.bf16.mxu0 %v1527_v0  ;;  %v663_v49 = vld [vmem:[#allocation4] sm:$0xff]  ;;  %s890_s21 = scalar_lea.sflag [#allocation8], %s1741_s1  ;;  %s1430_s8 = scalar_lea.vmem %s905_s24, 128 }
  0x81   : > { %v646_v28 = vld [vmem:[#allocation3] sm:$0xff]  ;;  %p1431_p4 = scmp.ne.s32.totalorder %s905_s24, %s1430_s8  ;;  %s1531_s15 = smov [#allocation15]  }
  0x82   : > { %p1919_p7 = scmp.ne.s32.totalorder %s1915_s30, 0  ;;  %s1434_s17 = sshll.u32 %s1531_s15, 4  ;;  %s1435_s17 = int_to_ptr.vmem [resolvable:$false] %s1434_s17 }
  0x83   : > { %1122 = vmatpush3.bf16.msra.mxu0 %v1272_v3  ;;  %s1436_s12 = scalar_lea.vmem %s1435_s17, 256  ;;  %p1437_p0 = scmp.lt.s32.totalorder %s905_s24, %s1435_s17 }
  0x84   : > { %1123 = vmatprep.subr.bf16.mxu0 %v1527_v0  ;;  %p1432_p9 = pnand %p1431_p4, %p1919_p7  ;;  %p1438_p13 = scmp.lt.s32.totalorder %s1436_s12, %s1430_s8 }
  0x85   : > { %s902_s16 = scalar_lea.hbm %s1918_s19, %s1092_s28 }
  0x86   : > { %p1433_p10 = pneg %p1432_p9  ;;  %p1439_p12 = por %p1438_p13, %p1437_p0 }
  0x87   : > { %1124 = vmatpush3.bf16.msra.mxu0 %v1273_v4 }
  0x88   : > { %1125 = vmatprep.subr.bf16.mxu0 %v1527_v0  ;;  %p1440_p6 = pnand %p1439_p12, %p1433_p10 }
  0x8b   : > { %1126 = vmatpush3.bf16.msra.mxu0 %v1274_v5 }
  0x8c   : > { %1127 = vmatprep.subr.bf16.mxu0 %v1527_v0 }
  0x8f   : > { %1128 = vmatpush3.bf16.msra.mxu0 %v1275_v6 }
  0x90   : > { %1129 = vmatprep.subr.bf16.mxu0 %v1527_v0 }
  0x93   : > { %1130 = vmatpush3.bf16.msra.mxu0 %v1276_v7 }
  0x94   : > { %1131 = vmatprep.subr.bf16.mxu0 %v1527_v0 }
  0x97   : > { %1132 = vmatpush3.bf16.msra.mxu0 %v1277_v8 }
  0x98   : > { %1137 = vmatprep.subr.bf16.mxu0 %v1527_v0 }
  0x9a   : > { %1134 = vmatmul.mubr.bf16.vlgmr.msra.gmra.mxu0 %v484_v10  ;;  %v859_v10 = vlaneseq }
  0x9b   : > { %1139 = vmatprep.mubr.msk.bf16.mxu0 %vm1528_vm0, %v1527_v0  ;;  %1138 = vmatpush3.bf16.xpose.msra.mxu0 %v603_v11 }
  0x9c   : > { %v860_v11 = vand.u32 127, %v859_v10 }
  0x9e   : > { %vm861_vm4 = vcmp.lt.s32.totalorder %v860_v11, 32 }
 0x15a   : > { %v590_v13 = vpop.f32.mrf.mxu0 }
 0x15b   : > { %v591_v14 = vadd.f32 %v1070_v12, %v590_v13 }
 0x15c   : > { %v1135_v15 = vpop.f32.mrf.mxu0 }
 0x15d   : > { %v596_v16 = vmul.f32 0.17677669, %v591_v14 }
 0x15e   : > { %v593_v17 = vpop.f32.mrf.mxu0 }
 0x15f   : > { %v597_v18 = vpack.c.bf16 %v596_v16, %v596_v16 }
 0x160   : > { %v1136_v19 = vpop.f32.mrf.mxu0 }
 0x161   : > { %598 = vst [vmem:[#allocation2] sm:$0xf] %v597_v18 }
 0x168   : > { %v605_v20 = vld [vmem:[#allocation2] sm:$0xf] }
 0x169   : > { %1140 = vmatmul.mubr.bf16.vlgmr.msra.gmra.mxu0 %v605_v20  ;;  %v1089_v20 = vld [vmem:[%s1916_s9] ss:$0 sm:$0xff] }
 0x229   : > { %v640_v22 = vpop.f32.mrf.mxu0 }
 0x22a   : > { %v648_v23 = vsel %vm647_vm2, %v640_v22, -inf }
 0x22b   : > { %649 = vmax.xlane.f32.xlu0 %v648_v23  ;;  %v1141_v24 = vpop.f32.mrf.mxu0 }
 0x22d   : > { %v643_v25 = vpop.f32.mrf.mxu0 }
 0x22f   : > { %v1142_v26 = vpop.f32.mrf.mxu0 }
 0x2b4   : > { %v650_v29 = vpop.xlane.xlu0 %649 }
 0x2b5   : > { %v651_v30 = vmax.f32 %v646_v28, %v650_v29 }
 0x2b7   : > { %v652_v31 = vsub.f32 %v646_v28, %v651_v30  ;;  %728 = vst.msk [vmem:[#allocation3] sm:$0xff] %vm599_vm1, %v651_v30  ;;  %657 = vperm.xlu0 %1268, %v651_v30  }
 0x2b9   : > { %v653_v38 = vmul.f32 1.442695, %v652_v31 }
 0x332   : > { %v658_v34 = vpop.permute.xlu0 %657 }
 0x333   : > { %v660_v35 = vsub.f32 %v640_v22, %v658_v34  ;;  %v1090_v22 = vld [vmem:[%s1917_s3] ss:$0 sm:$0xff] }
 0x335   : > { %v661_v36 = vmul.f32 1.442695, %v660_v35 }
 0x337   : > { %1286 = vpow2.f32 %v661_v36 }
 0x338   : > { %1288 = vpow2.f32 %v653_v38 }
 0x344   : > { %v1287_v37 = vpop.eup %1286 }
 0x345   : > { %v665_v39 = vsel %vm647_vm2, %v1287_v37, 0.0  ;;  %v678_v40 = vpack.c.bf16 %v1287_v37, %v1287_v37  ;;  %v1289_v41 = vpop.eup %1288 }
 0x346   : > { %666 = vadd.xlane.f32.xlu1 %v665_v39  ;;  %v664_v50 = vmul.f32 %v1289_v41, %v663_v49 }
 0x347   : > { %1146 = vmatmul.mubr.msk.bf16.vlgmr.msra.gmra.mxu1 %vm647_vm2, %v678_v40 }
 0x348   : > { %1165 = vmatprep.mubr.msk.bf16.mxu1 %vm1528_vm0, %v1527_v0  ;;  %1150 = vmatpush3.bf16.msra.mxu1 %v1278_v42 }
 0x349   : > { %1151 = vmatprep.subr.bf16.mxu1 %v1527_v0 }
 0x34c   : > { %1152 = vmatpush3.bf16.msra.mxu1 %v1279_v43 }
 0x34d   : > { %1153 = vmatprep.subr.bf16.mxu1 %v1527_v0 }
 0x350   : > { %1154 = vmatpush3.bf16.msra.mxu1 %v1280_v44 }
 0x351   : > { %1155 = vmatprep.subr.bf16.mxu1 %v1527_v0 }
 0x354   : > { %1156 = vmatpush3.bf16.msra.mxu1 %v1281_v45 }
 0x355   : > { %1157 = vmatprep.subr.bf16.mxu1 %v1527_v0 }
 0x357   : > { %674 = vperm.xlu1 %1269, %v1289_v41  }
 0x358   : > { %1158 = vmatpush3.bf16.msra.mxu1 %v1282_v46 }
 0x359   : > { %1159 = vmatprep.subr.bf16.mxu1 %v1527_v0 }
 0x35c   : > { %1160 = vmatpush3.bf16.msra.mxu1 %v1283_v47 }
 0x35d   : > { %1161 = vmatprep.subr.bf16.mxu1 %v1527_v0 }
 0x360   : > { %1162 = vmatpush3.bf16.msra.mxu1 %v1284_v48 }
 0x361   : > { %1163 = vmatprep.subr.bf16.mxu1 %v1527_v0 }
 0x364   : > { %1164 = vmatpush3.bf16.msra.mxu1 %v1285_v54 }
 0x3cf   : > { %v667_v51 = vpop.xlane.xlu1 %666 }
 0x3d0   : > { %v668_v52 = vadd.f32 %v667_v51, %v664_v50 }
 0x3d2   : > { %670 = vst.msk [vmem:[#allocation4] sm:$0xff] %vm599_vm1, %v668_v52 }
 0x3d3   : > { %v675_v60 = vpop.permute.xlu1 %674 }
 0x3d4   : > { %v677_v61 = vmul.f32 0.0, %v675_v60 }
 0x3d9   : > { %v733_v53 = vld [vmem:[#allocation4] sm:$0xff] }
 0x3da   : > { %1290 = vrcp.f32 %v733_v53 }
 0x3e7   : > { %v1291_v55 = vpop.eup %1290 }
 0x3e8   : > { %737 = vperm.xlu1 %1269, %v1291_v55  }
 0x407   : > { %v720_v56 = vpop.f32.mrf.mxu1 }
 0x408   : > { %v726_v62 = vadd.f32 %v720_v56, %v677_v61 }
 0x409   : > { %v1147_v57 = vpop.f32.mrf.mxu1 }
 0x40b   : > { %v723_v58 = vpop.f32.mrf.mxu1 }
 0x40d   : > { %v1148_v59 = vpop.f32.mrf.mxu1 }
 0x463   : > { %v738_v63 = vpop.permute.xlu1 %737 }
 0x464   : > { %v740_v0 = vmul.f32 %v738_v63, %v726_v62 }
 0x466   : > { %v741_v1 = vpack.c.bf16 %v740_v0, %v740_v0 }
 0x468   : > { %1166 = vmatmul.mubr.bf16.vlgmr.msra.gmra.mxu1 %v741_v1 }
 0x528   : > { %v847_v3 = vpop.f32.mrf.mxu1 }
 0x529   : > { %v848_v4 = vadd.f32 %v1080_v2, %v847_v3 }
 0x52a   : > { %v1167_v5 = vpop.f32.mrf.mxu1 }
 0x52b   : > { %v854_v6 = vadd.f32 %v848_v4, %v1780_v9 }
 0x52c   : > { %v850_v7 = vpop.f32.mrf.mxu1 }
 0x52d   : > { %855 = vadd.xlane.f32.xlu1 %v854_v6 }
 0x52e   : > { %v1168_v8 = vpop.f32.mrf.mxu1 }
 0x5b6   : > { %v856_v12 = vpop.xlane.xlu1 %855 }
 0x5b7   : > { %v857_v13 = vmul.f32 0.03125, %v856_v12 }
 0x5b9   : > { %v858_v14 = vsub.f32 %v854_v6, %v857_v13 }
 0x5bb   : > { %v864_v15 = vsel %vm861_vm4, %v858_v14, 0.0 }
 0x5bc   : > { %v865_v16 = vmul.f32 %v864_v15, %v864_v15 }
 0x5be   : > { %866 = vadd.xlane.f32.xlu0 %v865_v16 }
 0x647   : > { %v867_v17 = vpop.xlane.xlu0 %866 }
 0x648   : > { %v868_v18 = vmul.f32 0.03125, %v867_v17 }
 0x64a   : > { %v869_v19 = vadd.f32 1e-05, %v868_v18 }
 0x64c   : > { %1292 = vrsqrt.f32 %v869_v19 }
 0x659   : > { %v1293_v9 = vpop.eup %1292 }
 0x65a   : > { %v871_v21 = vmul.f32 %v1293_v9, %v864_v15 }
 0x65c   : > { %v879_v23 = vmul.f32 %v1089_v20, %v871_v21 }
 0x65e   : > { %v887_v24 = vadd.f32 %v1090_v22, %v879_v23 }
 0x660   : > { %888 = vst [vmem:[%s477_s18] sm:$0xff] %v887_v24 }
 0x661   : > { %1443 = shalt.err (!%p1440_p6)
}
 0x662   : > { %s1444_s2 = scalar_lea.hbm %s902_s16, 128  ;;  %s1448_s22 = scalar_lea.hbm %s1918_s19, 256 }
 0x663   : > { %p1445_p3 = scmp.ne.s32.totalorder %s902_s16, %s1444_s2  ;;  %p1449_p11 = scmp.lt.s32.totalorder %s902_s16, %s1918_s19 }
 0x664   : > { %p1450_p1 = scmp.lt.s32.totalorder %s1448_s22, %s1444_s2 }
 0x665   : > { %p1446_p2 = pnand %p1445_p3, %p1919_p7 }
 0x666   : > { %p1451_p8 = por %p1450_p1, %p1449_p11 }
 0x667   : > { %p1447_p5 = pneg %p1446_p2 }
 0x669   : > { %p1452_p4 = pnand %p1451_p8, %p1447_p5 }
 0x66b   : > { %1455 = shalt.err (!%p1452_p4)
}
 0x66c   : > { %1183 = dma.vmem_to_hbm [thread:$0]  (%p1919_p7), %s905_s24, 128, %s902_s16, %s890_s21  }
 0x66d PF: > { %s1920_s9 = sld [smem:[#allocation20_spill]]  ;;  %p1923_p10 = scmp.ge.s32.totalorder %s1518_s14, 2 }
 0x66e   : > { %s1921_s26 = sld [smem:[#allocation21_spill]] }
 0x673   : > { %s916_s29 = sand.u32 1, %s1920_s9  }
 0x674   : > { %p1922_p9 = scmp.ne.s32.totalorder %s1921_s26, 0  ;;  %s917_s3 = scalar_lea.sflag [#allocation8], %s916_s29 }
 0x676   : > { %p1203_p0 = pnand %p1923_p10, %p1922_p9 }
 0x678   : > { %p1204_p13 = pneg %p1203_p0 }
 0x67a   : > { %1493 = dma.done.wait (%p1204_p13), %s917_s3, 128  }
 0x67b   : > { %1495 = vsyncadd (%p1204_p13), %s917_s3, 4294967168  ;;  %s29_s14 = sadd.s32 1, %s1518_s14   ;;  %s1924_s28 = sld [smem:[#allocation24_spill]] }
 0x67c   : > { %p26_p12 = scmp.ge.s32.totalorder %s29_s14, 4   ;;  %s1925_s18 = sld [smem:[#allocation22_spill]] }
 0x67d   : > { %s1926_s30 = smov %s1502_s10  ;;  %s1927_s10 = smov %s1506_s11 }
 0x67e   : > { %s1929_s12 = smov %s1514_s13  ;;  %28 = sbr.rel (!%p26_p12) target bundleno = 16 (0x10), region = 141 }
 0x681   : > { %s1928_s11 = smov %s1924_s28 }
 0x682   : > { %s1930_s13 = smov %s1925_s18 }
 0x683   :  { %922 = vsyncpa [#allocation7], 1 }
 0x684   :  { %924 = vsyncpa [#allocation7 + $0x1], 1 }
 0x685   :  { %925 = vsyncpa [#allocation10], 1 }
 0x686   :  { %927 = vsyncpa [#allocation10 + $0x1], 1 }
 0x687   :  { %928 = vsyncpa [#allocation13], 1 }
 0x688   :  { %929 = vsyncpa [#allocation8], 1 }
 0x689   :  { %931 = vsyncpa [#allocation8 + $0x1], 1 }

</bundles_post_ra>
